<compile_context>
chip_gen: v6e
topology: v6e:2x2x1
jax: 0.10.0
libtpu: 0.0.40
codegen_flags: <defaults>
</compile_context>

<pallas_src>
import functools

import jax
import jax.numpy as jnp
from jax.experimental import pallas as pl
from jax.experimental.pallas import tpu as pltpu


def _round_up(x, m):
    return (x + m - 1) // m * m


# ----------------------------------------------------------------------------
# Pallas kernel: shared_mlp (3x [1x1 conv + folded BN + ReLU]) + max over K
# (neighbors packed along lanes; block-diagonal weights)
# ----------------------------------------------------------------------------
def _lfa_mlp_max_kernel(x_ref, w1_ref, b1_ref, w2_ref, b2_ref, w3_ref, b3_ref,
                        o_ref, *, k, c_out, n3):
    # x_ref : (tm, K*Dp)   bf16 -- lane-packed neighbors (one point per row).
    # w1_ref: (K*Dp, K*H1) bf16 block-diag    b1_ref: (1, K*H1) f32
    # w2_ref: (K*H1, K*H1) bf16 block-diag    b2_ref: (1, K*H1) f32
    # w3_ref: (n3, K*H1, (K//n3)*C_out) bf16  b3_ref: (n3, 1, (K//n3)*C_out) f32
    # o_ref : (tm, C_out) f32
    h = jnp.dot(x_ref[...], w1_ref[...], preferred_element_type=jnp.float32)
    h = jnp.maximum(h + b1_ref[...], 0.0)                       # (tm, K*H1)

    h = jnp.dot(h.astype(jnp.bfloat16), w2_ref[...],
                preferred_element_type=jnp.float32)
    h = jnp.maximum(h + b2_ref[...], 0.0)                       # (tm, K*H1)
    h = h.astype(jnp.bfloat16)

    # Layer 3 in n3 output chunks (each <= 128 lanes, v5e-friendly).  The
    # running jnp.maximum across chunks is the first level of the neighbor max.
    acc = None
    for s in range(n3):
        t = jnp.dot(h, w3_ref[s], preferred_element_type=jnp.float32)
        t = jnp.maximum(t + b3_ref[s], 0.0)                     # (tm, kg*C_out)
        acc = t if acc is None else jnp.maximum(acc, t)

    # Remaining max over the kg = k // n3 lane groups of width c_out.
    groups = k // n3
    if groups & (groups - 1) == 0:               # power of two: XLU roll tree
        shift = (groups // 2) * c_out
        while shift >= c_out:
            acc = jnp.maximum(acc, pltpu.roll(acc, shift, axis=1))
            shift //= 2
        out = acc[:, :c_out]
    else:                                        # fallback: static slice + max
        out = acc[:, :c_out]
        for g in range(1, groups):
            out = jnp.maximum(out, acc[:, g * c_out:(g + 1) * c_out])

    o_ref[...] = out.astype(o_ref.dtype)


def _block_diag(w, k):
    return jax.scipy.linalg.block_diag(*([w] * k))


def lfa_mlp_max(x, params, *, tile_m=1024):
    """x: (P, K, Dx) bf16/f32 -> (P, C_out) f32.  Handles P / D padding."""
    P, K, Dx = x.shape
    w1, b1 = params["w1"], params["b1"]
    w2, b2 = params["w2"], params["b2"]
    w3, b3 = params["w3"], params["b3"]
    H1 = w1.shape[1]
    C_out = w3.shape[1]

    # Sublane-align the per-neighbor feature width.  x usually arrives already
    # padded + bf16 from _build_concat_packed, making these no-ops.
    Dp = _round_up(Dx, 8)
    if Dp != Dx:
        x = jnp.pad(x, ((0, 0), (0, 0), (0, Dp - Dx)))
    if x.dtype != jnp.bfloat16:
        x = x.astype(jnp.bfloat16)
    if w1.shape[0] != Dp:
        w1 = jnp.pad(w1, ((0, Dp - w1.shape[0]), (0, 0)))

    # Big tiles amortize the ~0.35us/step pipeline overhead; per-step VMEM at
    # tile_m=1024 is only a few MiB so we no longer shrink the tile to force a
    # multi-step grid on single-TC chips.  (On v7x, large P naturally gives a
    # multi-step "parallel" grid that both TensorCores can share.)
    tm = max(16, min(tile_m, _round_up(P, 16)))
    tm = _round_up(tm, 16)
    P_pad = _round_up(P, tm)
    if P_pad != P:
        x = jnp.pad(x, ((0, P_pad - P), (0, 0), (0, 0)))

    # Lane-pack the K neighbors: one point = one (K*Dp)-lane row.
    x2 = x.reshape(P_pad, K * Dp)

    # Block-diagonal bf16 weights + lane-tiled f32 biases.
    w1_bd = _block_diag(w1, K).astype(jnp.bfloat16)              # (K*Dp, K*H1)
    w2_bd = _block_diag(w2, K).astype(jnp.bfloat16)              # (K*H1, K*H1)
    b1_t = jnp.tile(b1.reshape(1, -1), (1, K)).astype(jnp.float32)
    b2_t = jnp.tile(b2.reshape(1, -1), (1, K)).astype(jnp.float32)

    # Layer 3: split into output chunks of <= 128 lanes (v5e MXU is 4x128^2).
    n3 = 1
    while K % (n3 * 2) == 0 and (K // n3) * C_out > 128:
        n3 *= 2
    kg = K // n3
    w3_bd = _block_diag(w3, K)                                   # (K*H1, K*C_out)
    b3_full = jnp.tile(b3.reshape(1, -1), (1, K))                # (1, K*C_out)
    w3_st = jnp.stack([w3_bd[:, s * kg * C_out:(s + 1) * kg * C_out]
                       for s in range(n3)]).astype(jnp.bfloat16)
    b3_st = jnp.stack([b3_full[:, s * kg * C_out:(s + 1) * kg * C_out]
                       for s in range(n3)]).astype(jnp.float32)

    KD, KH = K * Dp, K * H1
    grid = (P_pad // tm,)

    out = pl.pallas_call(
        functools.partial(_lfa_mlp_max_kernel, k=K, c_out=C_out, n3=n3),
        out_shape=jax.ShapeDtypeStruct((P_pad, C_out), jnp.float32),
        grid_spec=pltpu.PrefetchScalarGridSpec(
            num_scalar_prefetch=0,
            grid=grid,
            in_specs=[
                pl.BlockSpec((tm, KD), lambda i: (i, 0)),        # streamed bf16 x
                pl.BlockSpec((KD, KH), lambda i: (0, 0)),
                pl.BlockSpec((1, KH), lambda i: (0, 0)),
                pl.BlockSpec((KH, KH), lambda i: (0, 0)),
                pl.BlockSpec((1, KH), lambda i: (0, 0)),
                pl.BlockSpec((n3, KH, kg * C_out), lambda i: (0, 0, 0)),
                pl.BlockSpec((n3, 1, kg * C_out), lambda i: (0, 0, 0)),
            ],
            out_specs=pl.BlockSpec((tm, C_out), lambda i: (i, 0)),
        ),
        compiler_params=pltpu.CompilerParams(
            dimension_semantics=("parallel",),
            # Per-step footprint (double-buffered bf16 x tile + f32
            # intermediates + weights) is a few MiB at tile_m=1024 -- well
            # inside 32 MiB on every generation (v7x physical VMEM is 64 MiB).
            vmem_limit_bytes=32 * 1024 * 1024),
    )(x2, w1_bd, b1_t, w2_bd, b2_t, w3_st, b3_st)

    return out[:P]


# ----------------------------------------------------------------------------
# Weighted KNN (matches the PyTorch KNN module, vectorized; plain JAX glue)
# ----------------------------------------------------------------------------
def weighted_knn(xyz, k):
    B, N, _ = xyz.shape
    n2k = min(2 * k, N)

    # ||a - b||^2 = ||a||^2 + ||b||^2 - 2 a.b  (MXU matmul form).
    sq = jnp.sum(xyz * xyz, axis=-1)                             # (B, N)
    inner = jnp.einsum("bid,bjd->bij", xyz, xyz,
                       precision=jax.lax.Precision.HIGHEST)      # (B, N, N)
    dist = jnp.maximum(sq[:, :, None] + sq[:, None, :] - 2.0 * inner, 0.0)

    neg_vals, top2k_idx = jax.lax.top_k(-dist, n2k)              # ascending dist
    d2k = -neg_vals                                              # (B, N, n2k)

    gather = jax.vmap(lambda pts, ids: pts[ids])                 # per batch
    local = gather(xyz, top2k_idx)                               # (B, N, n2k, 3)

    local_mean = jnp.mean(local, axis=2, keepdims=True)          # (B, N, 1, 3)
    local_std = jnp.std(local, axis=2, ddof=1)                   # (B, N, 3)
    denom = jnp.mean(local_std + 1e-6, axis=-1, keepdims=True)   # (B, N, 1)

    w = jnp.exp(-jnp.sum((local - local_mean) ** 2, axis=-1) / denom)  # (B,N,n2k)
    weighted_dist = d2k * w
    order = jnp.argsort(weighted_dist, axis=-1)                  # ascending
    idx = jnp.take_along_axis(top2k_idx, order[..., :k], axis=-1)  # (B, N, k)
    return idx


def _build_concat_packed(xyz, features, idx, dp):
    """Neighbor gather + centering + concat, emitted directly as bf16 padded to
    dp channels -> (B, N, k, dp).  Avoids extra f32 materialize / pad / cast
    HBM passes over the dominant tensor (biggest relative win on v5e)."""
    gather = jax.vmap(lambda pts, ids: pts[ids])
    neighbors_xyz = gather(xyz, idx)                              # (B, N, k, 3)
    xyz_centered = neighbors_xyz - xyz[:, :, None, :]
    neighbors_feats = gather(features, idx)                       # (B, N, k, C)
    features_centered = neighbors_feats - features[:, :, None, :]
    feats_rep = jnp.broadcast_to(features[:, :, None, :], neighbors_feats.shape)
    d = 2 * features.shape[-1] + 3
    parts = [feats_rep.astype(jnp.bfloat16),
             features_centered.astype(jnp.bfloat16),
             xyz_centered.astype(jnp.bfloat16)]
    if dp > d:
        B, N, k = idx.shape
        parts.append(jnp.zeros((B, N, k, dp - d), jnp.bfloat16))
    return jnp.concatenate(parts, axis=-1)                        # (B,N,k,dp) bf16


# ----------------------------------------------------------------------------
# Full LocalFeatureAggregation forward
# ----------------------------------------------------------------------------
def local_feature_aggregation(xyz, features, params, k, *, tile_m=1024):
    B, N, _ = xyz.shape
    idx = weighted_knn(xyz, k)                                    # (B, N, k)
    D = 2 * features.shape[-1] + 3
    Dp = _round_up(D, 8)
    concat = _build_concat_packed(xyz, features, idx, Dp)         # (B,N,k,Dp) bf16
    out = lfa_mlp_max(concat.reshape(B * N, k, Dp), params, tile_m=tile_m)
    return out.reshape(B, N, -1)


# ----------------------------------------------------------------------------
# Deterministic parameter construction (Conv2d 1x1 weights + eval-mode BN fold)
# ----------------------------------------------------------------------------
def make_params(key, in_channels, out_channels):
    D = in_channels * 2 + 3
    H1 = out_channels // 2
    keys = jax.random.split(key, 9)

    def conv_w(kk, cin, cout):
        # torch Conv2d weight (cout, cin, 1, 1) -> channels-last matmul (cin, cout)
        return 0.1 * jax.random.normal(kk, (cin, cout), jnp.float32)

    def bn(kg, kb, c):
        gamma = 1.0 + 0.05 * jax.random.normal(kg, (c,), jnp.float32)
        beta = 0.05 * jax.random.normal(kb, (c,), jnp.float32)
        running_mean = jnp.zeros((c,), jnp.float32)
        running_var = jnp.ones((c,), jnp.float32)
        eps = 1e-5
        s = gamma / jnp.sqrt(running_var + eps)
        b = beta - running_mean * s
        return s, b

    w1 = conv_w(keys[0], D, H1)
    w2 = conv_w(keys[1], H1, H1)
    w3 = conv_w(keys[2], H1, out_channels)
    s1, b1 = bn(keys[3], keys[4], H1)
    s2, b2 = bn(keys[5], keys[6], H1)
    s3, b3 = bn(keys[7], keys[8], out_channels)

    # Fold BN scale into the (bias-free) conv weights.
    return {
        "w1": w1 * s1[None, :], "b1": b1[None, :],
        "w2": w2 * s2[None, :], "b2": b2[None, :],
        "w3": w3 * s3[None, :], "b3": b3[None, :],
    }


# ----------------------------------------------------------------------------
# Pure-JAX reference of the kernel portion (mirrors the kernel's bf16/f32 math)
# ----------------------------------------------------------------------------
def _mlp_max_ref(x, p):
    bf = jnp.bfloat16
    h = jnp.einsum("mkd,dh->mkh", x.astype(bf), p["w1"].astype(bf),
                   preferred_element_type=jnp.float32)
    h = jnp.maximum(h + p["b1"][None], 0.0)
    h = jnp.einsum("mkh,hg->mkg", h.astype(bf), p["w2"].astype(bf),
                   preferred_element_type=jnp.float32)
    h = jnp.maximum(h + p["b2"][None], 0.0)
    h = jnp.einsum("mkh,hg->mkg", h.astype(bf), p["w3"].astype(bf),
                   preferred_element_type=jnp.float32)
    h = jnp.maximum(h + p["b3"][None], 0.0)
    return jnp.max(h, axis=1)


if __name__ == "__main__":
    B, N, C_in, C_out, K = 2, 16, 4, 32, 8

    key = jax.random.PRNGKey(0)
    k_xyz, k_feat, k_param = jax.random.split(key, 3)
    xyz = jax.random.normal(k_xyz, (B, N, 3), jnp.float32)
    features = jax.random.normal(k_feat, (B, N, C_in), jnp.float32)
    params = make_params(k_param, C_in, C_out)

    out = local_feature_aggregation(xyz, features, params, K)
    out = jax.block_until_ready(out)
    assert out.shape == (B, N, C_out), out.shape

    # sanity: Pallas MLP+max matches a pure-JAX reference on the same concat
    # input (same bf16 quantization of the streamed tensor).
    idx = weighted_knn(xyz, K)
    D = 2 * C_in + 3
    Dp = _round_up(D, 8)
    xcat = _build_concat_packed(xyz, features, idx, Dp).reshape(B * N, K, Dp)
    ref = _mlp_max_ref(xcat[..., :D], params).reshape(B, N, C_out)
    assert jnp.allclose(out, ref, atol=1e-2, rtol=1e-2), (
        float(jnp.max(jnp.abs(out - ref))))

    print("KERNEL_OK")
</pallas_src>

<mosaic_0001>
module attributes {stable_mosaic.version = 11 : i64} {
  func.func @_lfa_mlp_max_kernel(%arg0: i32, %arg1: memref<32x128xbf16, #tpu.memory_space<vmem>>, %arg2: memref<128x128xbf16, #tpu.memory_space<vmem>>, %arg3: memref<1x128xf32, #tpu.memory_space<vmem>>, %arg4: memref<128x128xbf16, #tpu.memory_space<vmem>>, %arg5: memref<1x128xf32, #tpu.memory_space<vmem>>, %arg6: memref<2x128x128xbf16, #tpu.memory_space<vmem>>, %arg7: memref<2x1x128xf32, #tpu.memory_space<vmem>>, %arg8: memref<32x32xf32, #tpu.memory_space<vmem>>) attributes {dimension_semantics = [#tpu.dimension_semantics<parallel>], iteration_bounds = array<i64: 1>, scalar_prefetch = 0 : i64, scratch_operands = 0 : i64, tpu.core_type = #tpu.core_type<tc>, window_params = [{transform_indices = @transform_0, window_bounds = array<i64: 32, 128>}, {pipeline_mode = #tpu.pipeline_mode<synchronous>, transform_indices = @transform_1, window_bounds = array<i64: 128, 128>}, {pipeline_mode = #tpu.pipeline_mode<synchronous>, transform_indices = @transform_2, window_bounds = array<i64: 1, 128>}, {pipeline_mode = #tpu.pipeline_mode<synchronous>, transform_indices = @transform_3, window_bounds = array<i64: 128, 128>}, {pipeline_mode = #tpu.pipeline_mode<synchronous>, transform_indices = @transform_4, window_bounds = array<i64: 1, 128>}, {pipeline_mode = #tpu.pipeline_mode<synchronous>, transform_indices = @transform_5, window_bounds = array<i64: 2, 128, 128>}, {pipeline_mode = #tpu.pipeline_mode<synchronous>, transform_indices = @transform_6, window_bounds = array<i64: 2, 1, 128>}, {transform_indices = @transform_7, window_bounds = array<i64: 32, 32>}]} {
    %c0 = arith.constant 0 : index
    %c0_0 = arith.constant 0 : index
    %0 = vector.load %arg1[%c0, %c0_0] : memref<32x128xbf16, #tpu.memory_space<vmem>>, vector<32x128xbf16>
    %c0_1 = arith.constant 0 : index
    %c0_2 = arith.constant 0 : index
    %1 = vector.load %arg2[%c0_1, %c0_2] : memref<128x128xbf16, #tpu.memory_space<vmem>>, vector<128x128xbf16>
    %cst = arith.constant dense<0.000000e+00> : vector<32x128xf32>
    %2 = tpu.matmul %0, %1, %cst {dimension_numbers = #tpu.dot_dimension_numbers<[1], [0], [0], [1], [0, 0, 1, 1], [], []>} : vector<32x128xbf16>, vector<128x128xbf16>, vector<32x128xf32> -> vector<32x128xf32>
    %c0_3 = arith.constant 0 : index
    %c0_4 = arith.constant 0 : index
    %3 = vector.load %arg3[%c0_3, %c0_4] : memref<1x128xf32, #tpu.memory_space<vmem>>, vector<1x128xf32>
    %4 = vector.broadcast %3 : vector<1x128xf32> to vector<32x128xf32>
    %5 = arith.addf %2, %4 : vector<32x128xf32>
    %cst_5 = arith.constant 0.000000e+00 : f32
    %6 = vector.broadcast %cst_5 : f32 to vector<32x128xf32>
    %7 = arith.maximumf %5, %6 : vector<32x128xf32>
    %8 = arith.truncf %7 : vector<32x128xf32> to vector<32x128xbf16>
    %c0_6 = arith.constant 0 : index
    %c0_7 = arith.constant 0 : index
    %9 = vector.load %arg4[%c0_6, %c0_7] : memref<128x128xbf16, #tpu.memory_space<vmem>>, vector<128x128xbf16>
    %cst_8 = arith.constant dense<0.000000e+00> : vector<32x128xf32>
    %10 = tpu.matmul %8, %9, %cst_8 {dimension_numbers = #tpu.dot_dimension_numbers<[1], [0], [0], [1], [0, 0, 1, 1], [], []>} : vector<32x128xbf16>, vector<128x128xbf16>, vector<32x128xf32> -> vector<32x128xf32>
    %c0_9 = arith.constant 0 : index
    %c0_10 = arith.constant 0 : index
    %11 = vector.load %arg5[%c0_9, %c0_10] : memref<1x128xf32, #tpu.memory_space<vmem>>, vector<1x128xf32>
    %12 = vector.broadcast %11 : vector<1x128xf32> to vector<32x128xf32>
    %13 = arith.addf %10, %12 : vector<32x128xf32>
    %cst_11 = arith.constant 0.000000e+00 : f32
    %14 = vector.broadcast %cst_11 : f32 to vector<32x128xf32>
    %15 = arith.maximumf %13, %14 : vector<32x128xf32>
    %16 = arith.truncf %15 : vector<32x128xf32> to vector<32x128xbf16>
    %c0_12 = arith.constant 0 : index
    %c0_13 = arith.constant 0 : index
    %c0_14 = arith.constant 0 : index
    %17 = vector.load %arg6[%c0_12, %c0_13, %c0_14] : memref<2x128x128xbf16, #tpu.memory_space<vmem>>, vector<1x128x128xbf16>
    %18 = vector.shape_cast %17 : vector<1x128x128xbf16> to vector<128x128xbf16>
    %cst_15 = arith.constant dense<0.000000e+00> : vector<32x128xf32>
    %19 = tpu.matmul %16, %18, %cst_15 {dimension_numbers = #tpu.dot_dimension_numbers<[1], [0], [0], [1], [0, 0, 1, 1], [], []>} : vector<32x128xbf16>, vector<128x128xbf16>, vector<32x128xf32> -> vector<32x128xf32>
    %c0_16 = arith.constant 0 : index
    %c0_17 = arith.constant 0 : index
    %c0_18 = arith.constant 0 : index
    %20 = vector.load %arg7[%c0_16, %c0_17, %c0_18] : memref<2x1x128xf32, #tpu.memory_space<vmem>>, vector<1x1x128xf32>
    %21 = vector.shape_cast %20 : vector<1x1x128xf32> to vector<1x128xf32>
    %22 = vector.broadcast %21 : vector<1x128xf32> to vector<32x128xf32>
    %23 = arith.addf %19, %22 : vector<32x128xf32>
    %cst_19 = arith.constant 0.000000e+00 : f32
    %24 = vector.broadcast %cst_19 : f32 to vector<32x128xf32>
    %25 = arith.maximumf %23, %24 : vector<32x128xf32>
    %c1 = arith.constant 1 : index
    %c0_20 = arith.constant 0 : index
    %c0_21 = arith.constant 0 : index
    %26 = vector.load %arg6[%c1, %c0_20, %c0_21] : memref<2x128x128xbf16, #tpu.memory_space<vmem>>, vector<1x128x128xbf16>
    %27 = vector.shape_cast %26 : vector<1x128x128xbf16> to vector<128x128xbf16>
    %cst_22 = arith.constant dense<0.000000e+00> : vector<32x128xf32>
    %28 = tpu.matmul %16, %27, %cst_22 {dimension_numbers = #tpu.dot_dimension_numbers<[1], [0], [0], [1], [0, 0, 1, 1], [], []>} : vector<32x128xbf16>, vector<128x128xbf16>, vector<32x128xf32> -> vector<32x128xf32>
    %c1_23 = arith.constant 1 : index
    %c0_24 = arith.constant 0 : index
    %c0_25 = arith.constant 0 : index
    %29 = vector.load %arg7[%c1_23, %c0_24, %c0_25] : memref<2x1x128xf32, #tpu.memory_space<vmem>>, vector<1x1x128xf32>
    %30 = vector.shape_cast %29 : vector<1x1x128xf32> to vector<1x128xf32>
    %31 = vector.broadcast %30 : vector<1x128xf32> to vector<32x128xf32>
    %32 = arith.addf %28, %31 : vector<32x128xf32>
    %cst_26 = arith.constant 0.000000e+00 : f32
    %33 = vector.broadcast %cst_26 : f32 to vector<32x128xf32>
    %34 = arith.maximumf %32, %33 : vector<32x128xf32>
    %35 = arith.maximumf %25, %34 : vector<32x128xf32>
    %c64_i32 = arith.constant 64 : i32
    %36 = tpu.dynamic_rotate %35 by %c64_i32 dim 1 : vector<32x128xf32>, i32 -> vector<32x128xf32>
    %37 = arith.maximumf %35, %36 : vector<32x128xf32>
    %c32_i32 = arith.constant 32 : i32
    %38 = tpu.dynamic_rotate %37 by %c32_i32 dim 1 : vector<32x128xf32>, i32 -> vector<32x128xf32>
    %39 = arith.maximumf %37, %38 : vector<32x128xf32>
    %40 = vector.extract_strided_slice %39 {offsets = [0, 0], sizes = [32, 32], strides = [1, 1]} : vector<32x128xf32> to vector<32x32xf32>
    %c0_27 = arith.constant 0 : index
    %c0_28 = arith.constant 0 : index
    %41 = vector.load %arg8[%c0_27, %c0_28] : memref<32x32xf32, #tpu.memory_space<vmem>>, vector<32x32xf32>
    tpu.vector_store %arg8[%c0_27, %c0_28], %40 {strides = array<i32>} : memref<32x32xf32, #tpu.memory_space<vmem>>, vector<32x32xf32>,
    return
  }
  func.func @transform_0(%arg0: i32) -> (i32, i32) {
    %c0_i32 = arith.constant 0 : i32
    %c0_i32_0 = arith.constant 0 : i32
    return %arg0, %c0_i32 : i32, i32
  }
  func.func @transform_1(%arg0: i32) -> (i32, i32) {
    %c0_i32 = arith.constant 0 : i32
    %c0_i32_0 = arith.constant 0 : i32
    %c0_i32_1 = arith.constant 0 : i32
    return %c0_i32, %c0_i32_0 : i32, i32
  }
  func.func @transform_2(%arg0: i32) -> (i32, i32) {
    %c0_i32 = arith.constant 0 : i32
    %c0_i32_0 = arith.constant 0 : i32
    %c0_i32_1 = arith.constant 0 : i32
    return %c0_i32, %c0_i32_0 : i32, i32
  }
  func.func @transform_3(%arg0: i32) -> (i32, i32) {
    %c0_i32 = arith.constant 0 : i32
    %c0_i32_0 = arith.constant 0 : i32
    %c0_i32_1 = arith.constant 0 : i32
    return %c0_i32, %c0_i32_0 : i32, i32
  }
  func.func @transform_4(%arg0: i32) -> (i32, i32) {
    %c0_i32 = arith.constant 0 : i32
    %c0_i32_0 = arith.constant 0 : i32
    %c0_i32_1 = arith.constant 0 : i32
    return %c0_i32, %c0_i32_0 : i32, i32
  }
  func.func @transform_5(%arg0: i32) -> (i32, i32, i32) {
    %c0_i32 = arith.constant 0 : i32
    %c0_i32_0 = arith.constant 0 : i32
    %c0_i32_1 = arith.constant 0 : i32
    %c0_i32_2 = arith.constant 0 : i32
    return %c0_i32, %c0_i32_0, %c0_i32_1 : i32, i32, i32
  }
  func.func @transform_6(%arg0: i32) -> (i32, i32, i32) {
    %c0_i32 = arith.constant 0 : i32
    %c0_i32_0 = arith.constant 0 : i32
    %c0_i32_1 = arith.constant 0 : i32
    %c0_i32_2 = arith.constant 0 : i32
    return %c0_i32, %c0_i32_0, %c0_i32_1 : i32, i32, i32
  }
  func.func @transform_7(%arg0: i32) -> (i32, i32) {
    %c0_i32 = arith.constant 0 : i32
    %c0_i32_0 = arith.constant 0 : i32
    return %arg0, %c0_i32 : i32, i32
  }
}

</mosaic_0001>

<bundles_post_ra>
// kernel: tpu_custom_call.1
= control target key start
LH: loop header
LB: loop body
LE: loop exit
PB: predicated region body
PF: predicated region fallthrough
CT: control target
= control target key end

     0   :  { %12 = vsyncpa [#allocation3], 0  ;;  %s1057_s0 = inlined_call_operand.hbm [shape: bf16[32,128], index: 0, kind: input, shape index: {}]   ;;  %s1058_s1 = inlined_call_operand.hbm [shape: bf16[128,128], index: 1, kind: input, shape index: {}]   ;;  %s1059_s2 = inlined_call_operand.vmem [shape: f32[1,128], index: 2, kind: input, shape index: {}]   ;;  %s1060_s3 = inlined_call_operand.hbm [shape: bf16[128,128], index: 3, kind: input, shape index: {}]   ;;  %s1061_s4 = inlined_call_operand.vmem [shape: f32[1,128], index: 4, kind: input, shape index: {}]   ;;  %s1062_s5 = inlined_call_operand.hbm [shape: bf16[2,128,128], index: 5, kind: input, shape index: {}]   ;;  %s1063_s6 = inlined_call_operand.vmem [shape: f32[2,1,128], index: 6, kind: input, shape index: {}]   ;;  %s1064_s7 = inlined_call_operand.hbm [shape: f32[32,32], index: 7, kind: output, shape index: {}]  }
   0x1   :  { %13 = vsyncpa [#allocation6], 0 }
   0x2   :  { %14 = vsyncpa [#allocation9], 0 }
   0x3   :  { %15 = vsyncpa [#allocation4], 0  ;;  %s964_s24 = smov [#allocation5]   ;;  %s965_s26 = smov [#allocation2]  }
   0x4   :  { %s33_s25 = sshll.u32 %s964_s24, 4  ;;  %s21_s27 = sshll.u32 %s965_s26, 4  ;;  %s34_s25 = int_to_ptr.vmem [resolvable:$true] %s33_s25  ;;  %s22_s27 = int_to_ptr.vmem [resolvable:$true] %s21_s27 }
   0x5   :  { %s864_s28 = scalar_lea.vmem %s34_s25, 1024  ;;  %p869_p1 = scmp.lt.s32.totalorder %s34_s25, %s34_s25 }
   0x6   :  { %p865_p0 = scmp.ne.s32.totalorder %s34_s25, %s864_s28  ;;  %p870_p2 = scmp.lt.s32.totalorder %s864_s28, %s864_s28 }
   0x8   :  { %p871_p3 = por %p870_p2, %p869_p1 }
   0xa   :  { %p872_p4 = pnand %p871_p3, %p865_p0 }
   0xc   :  { %875 = shalt.err (!%p872_p4)
}
   0xd   :  { %s966_s29 = smov 64   ;;  %s967_s30 = smov 4  }
   0xe   :  { %39 = dma.hbm_to_vmem [thread:$0]  %s1058_s1, 1024, %s34_s25, [#allocation6], %s966_s29, %s966_s29, %s967_s30  }
   0xf   :  { %s884_s10 = scalar_lea.vmem %s22_s27, 256  ;;  %p889_p6 = scmp.lt.s32.totalorder %s22_s27, %s22_s27 }
  0x10   :  { %p885_p5 = scmp.ne.s32.totalorder %s22_s27, %s884_s10  ;;  %p890_p7 = scmp.lt.s32.totalorder %s884_s10, %s884_s10 }
  0x12   :  { %p891_p8 = por %p890_p7, %p889_p6 }
  0x14   :  { %p892_p9 = pnand %p891_p8, %p885_p5 }
  0x16   :  { %895 = shalt.err (!%p892_p9)
}
  0x17   :  { %27 = dma.hbm_to_vmem [thread:$0]  %s1057_s0, 256, %s22_s27, [#allocation3], %s966_s29, %s966_s29, %s967_s30  }
  0x18   :  { %s968_s13 = smov [#allocation7]   ;;  %s969_s15 = smov [#allocation8]  }
  0x19   :  { %s47_s14 = sshll.u32 %s968_s13, 4  ;;  %s61_s16 = sshll.u32 %s969_s15, 4  ;;  %s48_s14 = int_to_ptr.vmem [resolvable:$true] %s47_s14  ;;  %s62_s16 = int_to_ptr.vmem [resolvable:$true] %s61_s16 }
  0x1a   :  { %s904_s1 = scalar_lea.vmem %s48_s14, 1024  ;;  %p909_p11 = scmp.lt.s32.totalorder %s48_s14, %s48_s14 }
  0x1b   :  { %p905_p10 = scmp.ne.s32.totalorder %s48_s14, %s904_s1  ;;  %p910_p12 = scmp.lt.s32.totalorder %s904_s1, %s904_s1 }
  0x1d   :  { %p911_p13 = por %p910_p12, %p909_p11 }
  0x1f   :  { %p912_p0 = pnand %p911_p13, %p905_p10 }
  0x21   :  { %915 = shalt.err (!%p912_p0)
}
  0x22   :  { %53 = dma.hbm_to_vmem [thread:$0]  %s1060_s3, 1024, %s48_s14, [#allocation6], %s966_s29, %s966_s29, %s967_s30  }
  0x23   :  { %s924_s0 = scalar_lea.vmem %s62_s16, 2048  ;;  %p929_p2 = scmp.lt.s32.totalorder %s62_s16, %s62_s16 }
  0x24   :  { %p925_p1 = scmp.ne.s32.totalorder %s62_s16, %s924_s0  ;;  %p930_p3 = scmp.lt.s32.totalorder %s924_s0, %s924_s0 }
  0x26   :  { %p931_p4 = por %p930_p3, %p929_p2 }
  0x28   :  { %p932_p5 = pnand %p931_p4, %p925_p1 }
  0x2a   :  { %935 = shalt.err (!%p932_p5)
}
  0x2b   :  { %67 = dma.hbm_to_vmem [thread:$0]  %s1062_s5, 2048, %s62_s16, [#allocation9], %s966_s29, %s966_s29, %s967_s30  }
  0x2c   :  { %956 = dma.done.wait [#allocation3], 256  }
  0x2d   :  { %957 = vsyncadd [#allocation3], 4294967040 }
  0x2e   :  { %958 = dma.done.wait [#allocation6], 2048  }
  0x2f   :  { %959 = vsyncadd [#allocation6], 4294965248 }
  0x30   :  { %960 = dma.done.wait [#allocation9], 2048  }
  0x31   :  { %961 = vsyncadd [#allocation9], 4294965248  ;;  %v822_v0 = vld [vmem:[#allocation5 + $0x38] sm:$0xff]   ;;  %v823_v1 = vld [vmem:[#allocation5 + $0x30] sm:$0xff]   ;;  %vm629_vm0 = vcmask 261120   ;;  %s971_s25 = smov [#allocation10]  }
  0x32   :  { %732 = vmatprep.subr.bf16.mxu0 %v822_v0  ;;  %v824_v2 = vld [vmem:[#allocation5 + $0x28] sm:$0xff]   ;;  %v825_v3 = vld [vmem:[#allocation5 + $0x20] sm:$0xff]   ;;  %v830_v4 = vld [vmem:[#allocation2] sm:$0xff]   ;;  %s639_s26 = sshll.u32 %s971_s25, 4  ;;  %s640_s26 = int_to_ptr.vmem [resolvable:$true] %s639_s26 }
  0x33   :  { %733 = vmatpush3.bf16.msra.mxu0 %v822_v0  ;;  %748 = vmatprep.mubr.bf16.mxu0 %v830_v4  ;;  %v832_v5 = vld [vmem:[#allocation7 + $0x38] sm:$0xff]   ;;  %v833_v6 = vld [vmem:[#allocation7 + $0x30] sm:$0xff]   ;;  %v834_v9 = vld [vmem:[#allocation7 + $0x28] sm:$0xff]   ;;  %s936_s27 = scalar_lea.vmem %s640_s26, 512  ;;  %p941_p7 = scmp.lt.s32.totalorder %s640_s26, %s640_s26 }
  0x34   :  { %734 = vmatprep.subr.bf16.mxu0 %v823_v1  ;;  %v826_v7 = vld [vmem:[#allocation5 + $0x18] sm:$0xff]   ;;  %752 = vmatprep.subr.bf16.mxu1 %v832_v5  ;;  %v827_v8 = vld [vmem:[#allocation5 + $0x10] sm:$0xff]   ;;  %v835_v10 = vld [vmem:[#allocation7 + $0x20] sm:$0xff]   ;;  %p937_p6 = scmp.ne.s32.totalorder %s640_s26, %s936_s27  ;;  %p942_p8 = scmp.lt.s32.totalorder %s936_s27, %s936_s27 }
  0x35   :  { %753 = vmatpush3.bf16.msra.mxu1 %v832_v5  ;;  %v828_v11 = vld [vmem:[#allocation5 + $0x8] sm:$0xff]   ;;  %v836_v12 = vld [vmem:[#allocation7 + $0x18] sm:$0xff]   ;;  %v829_v13 = vld [vmem:[#allocation5] sm:$0xff]  }
  0x36   :  { %754 = vmatprep.subr.bf16.mxu1 %v833_v6  ;;  %v831_v14 = vld [vmem:[#allocation2 + $0x8] sm:$0xff]   ;;  %v837_v15 = vld [vmem:[#allocation7 + $0x10] sm:$0xff]   ;;  %v838_v16 = vld [vmem:[#allocation7 + $0x8] sm:$0xff]   ;;  %p943_p9 = por %p942_p8, %p941_p7 }
  0x37   :  { %735 = vmatpush3.bf16.msra.mxu0 %v823_v1  ;;  %v839_v17 = vld [vmem:[#allocation7] sm:$0xff]   ;;  %v840_v18 = vld [vmem:[#allocation8 + $0x38] sm:$0xff]   ;;  %v842_v20 = vld [vmem:[#allocation8 + $0x30] sm:$0xff]  }
  0x38   :  { %736 = vmatprep.subr.bf16.mxu0 %v824_v2  ;;  %v841_v19 = vld [vmem:[#allocation8 + $0x78] sm:$0xff]   ;;  %v844_v21 = vld [vmem:[#allocation8 + $0x28] sm:$0xff]   ;;  %v846_v22 = vld [vmem:[#allocation8 + $0x20] sm:$0xff]   ;;  %p944_p10 = pnand %p943_p9, %p937_p6 }
  0x39   :  { %755 = vmatpush3.bf16.msra.mxu1 %v833_v6  ;;  %v848_v23 = vld [vmem:[#allocation8 + $0x18] sm:$0xff]   ;;  %v653_v26 = vld [vmem:[%s1059_s2] ss:$0 sm:$0xff]  ;;  %v845_v40 = vld [vmem:[#allocation8 + $0x68] sm:$0xff]  }
  0x3a   :  { %756 = vmatprep.subr.bf16.mxu1 %v834_v9  ;;  %v843_v39 = vld [vmem:[#allocation8 + $0x70] sm:$0xff]   ;;  %v847_v41 = vld [vmem:[#allocation8 + $0x60] sm:$0xff]   ;;  %v849_v42 = vld [vmem:[#allocation8 + $0x58] sm:$0xff]  }
  0x3b   :  { %737 = vmatpush3.bf16.msra.mxu0 %v824_v2  ;;  %v850_v43 = vld [vmem:[#allocation8 + $0x10] sm:$0xff]   ;;  %v852_v45 = vld [vmem:[#allocation8 + $0x8] sm:$0xff]   ;;  %v854_v47 = vld [vmem:[#allocation8] sm:$0xff]  }
  0x3c   :  { %738 = vmatprep.subr.bf16.mxu0 %v825_v3  ;;  %v851_v44 = vld [vmem:[#allocation8 + $0x50] sm:$0xff]   ;;  %v853_v46 = vld [vmem:[#allocation8 + $0x48] sm:$0xff]   ;;  %v855_v48 = vld [vmem:[#allocation8 + $0x40] sm:$0xff]  }
  0x3d   :  { %757 = vmatpush3.bf16.msra.mxu1 %v834_v9  ;;  %v664_v51 = vld [vmem:[%s1061_s4] ss:$0 sm:$0xff]  ;;  %v683_v1 = vld [vmem:[%s1063_s6 + $0x1] ss:$0 sm:$0xff] }
  0x3e   :  { %758 = vmatprep.subr.bf16.mxu1 %v835_v10  ;;  %v673_v0 = vld [vmem:[%s1063_s6] ss:$0 sm:$0xff]  ;;  %s970_s6 = smov 32  }
  0x3f   :  { %739 = vmatpush3.bf16.msra.mxu0 %v825_v3 }
  0x40   :  { %740 = vmatprep.subr.bf16.mxu0 %v826_v7 }
  0x41   :  { %759 = vmatpush3.bf16.msra.mxu1 %v835_v10 }
  0x42   :  { %760 = vmatprep.subr.bf16.mxu1 %v836_v12 }
  0x43   :  { %741 = vmatpush3.bf16.msra.mxu0 %v826_v7 }
  0x44   :  { %742 = vmatprep.subr.bf16.mxu0 %v827_v8 }
  0x45   :  { %761 = vmatpush3.bf16.msra.mxu1 %v836_v12 }
  0x46   :  { %762 = vmatprep.subr.bf16.mxu1 %v837_v15 }
  0x47   :  { %743 = vmatpush3.bf16.msra.mxu0 %v827_v8 }
  0x48   :  { %744 = vmatprep.subr.bf16.mxu0 %v828_v11 }
  0x49   :  { %763 = vmatpush3.bf16.msra.mxu1 %v837_v15 }
  0x4a   :  { %764 = vmatprep.subr.bf16.mxu1 %v838_v16 }
  0x4b   :  { %745 = vmatpush3.bf16.msra.mxu0 %v828_v11 }
  0x4c   :  { %746 = vmatprep.subr.bf16.mxu0 %v829_v13 }
  0x4d   :  { %765 = vmatpush3.bf16.msra.mxu1 %v838_v16 }
  0x4e   :  { %766 = vmatprep.subr.bf16.mxu1 %v839_v17 }
  0x4f   :  { %747 = vmatpush3.bf16.msra.mxu0 %v829_v13 }
  0x50   :  { %772 = vmatprep.subr.bf16.mxu0 %v840_v18 }
  0x51   :  { %767 = vmatpush3.bf16.msra.mxu1 %v839_v17 }
  0x52   :  { %749 = vmatmul.mubr.bf16.vlgmr.msra.gmra.mxu0 %v831_v14  ;;  %792 = vmatprep.subr.bf16.mxu1 %v841_v19 }
  0x53   :  { %773 = vmatpush3.bf16.msra.mxu0 %v840_v18 }
  0x54   :  { %774 = vmatprep.subr.bf16.mxu0 %v842_v20 }
  0x57   :  { %775 = vmatpush3.bf16.msra.mxu0 %v842_v20 }
  0x58   :  { %776 = vmatprep.subr.bf16.mxu0 %v844_v21 }
  0x5b   :  { %777 = vmatpush3.bf16.msra.mxu0 %v844_v21 }
  0x5c   :  { %778 = vmatprep.subr.bf16.mxu0 %v846_v22 }
  0x5f   :  { %779 = vmatpush3.bf16.msra.mxu0 %v846_v22 }
  0x60   :  { %780 = vmatprep.subr.bf16.mxu0 %v848_v23 }
  0x63   :  { %781 = vmatpush3.bf16.msra.mxu0 %v848_v23 }
  0x64   :  { %782 = vmatprep.subr.bf16.mxu0 %v850_v43 }
  0x67   :  { %783 = vmatpush3.bf16.msra.mxu0 %v850_v43 }
  0x68   :  { %784 = vmatprep.subr.bf16.mxu0 %v852_v45 }
  0x6b   :  { %785 = vmatpush3.bf16.msra.mxu0 %v852_v45 }
  0x6c   :  { %786 = vmatprep.subr.bf16.mxu0 %v854_v47 }
  0x6f   :  { %787 = vmatpush3.bf16.msra.mxu0 %v854_v47 }
 0x112   :  { %v750_v24 = vpop.f32.mrf.mxu0 }
 0x113   :  { %v213_v30 = vadd.f32 %v750_v24, %v653_v26 }
 0x114   :  { %v204_v25 = vpop.f32.mrf.mxu0 }
 0x115   :  { %v205_v28 = vadd.f32 %v653_v26, %v204_v25  ;;  %v221_v36 = vmax.f32 %v213_v30, 0.0 }
 0x116   :  { %v751_v27 = vpop.f32.mrf.mxu0 }
 0x117   :  { %v216_v29 = vadd.f32 %v751_v27, %v653_v26  ;;  %v219_v34 = vmax.f32 %v205_v28, 0.0 }
 0x118   :  { %v207_v31 = vpop.f32.mrf.mxu0 }
 0x119   :  { %v208_v32 = vadd.f32 %v653_v26, %v207_v31  ;;  %v222_v33 = vmax.f32 %v216_v29, 0.0 }
 0x11b   :  { %v220_v35 = vmax.f32 %v208_v32, 0.0  ;;  %v224_v38 = vpack.c.bf16 %v222_v33, %v221_v36 }
 0x11d   :  { %v223_v37 = vpack.c.bf16 %v220_v35, %v219_v34 }
 0x11f   :  { %768 = vmatprep.mubr.bf16.mxu1 %v223_v37 }
 0x120   :  { %769 = vmatmul.mubr.bf16.vlgmr.msra.gmra.mxu1 %v224_v38 }
 0x121   :  { %793 = vmatpush3.bf16.msra.mxu1 %v841_v19 }
 0x122   :  { %794 = vmatprep.subr.bf16.mxu1 %v843_v39 }
 0x125   :  { %795 = vmatpush3.bf16.msra.mxu1 %v843_v39 }
 0x126   :  { %796 = vmatprep.subr.bf16.mxu1 %v845_v40 }
 0x129   :  { %797 = vmatpush3.bf16.msra.mxu1 %v845_v40 }
 0x12a   :  { %798 = vmatprep.subr.bf16.mxu1 %v847_v41 }
 0x12d   :  { %799 = vmatpush3.bf16.msra.mxu1 %v847_v41 }
 0x12e   :  { %800 = vmatprep.subr.bf16.mxu1 %v849_v42 }
 0x131   :  { %801 = vmatpush3.bf16.msra.mxu1 %v849_v42 }
 0x132   :  { %802 = vmatprep.subr.bf16.mxu1 %v851_v44 }
 0x135   :  { %803 = vmatpush3.bf16.msra.mxu1 %v851_v44 }
 0x136   :  { %804 = vmatprep.subr.bf16.mxu1 %v853_v46 }
 0x139   :  { %805 = vmatpush3.bf16.msra.mxu1 %v853_v46 }
 0x13a   :  { %806 = vmatprep.subr.bf16.mxu1 %v855_v48 }
 0x13d   :  { %807 = vmatpush3.bf16.msra.mxu1 %v855_v48 }
 0x1e0   :  { %v770_v49 = vpop.f32.mrf.mxu1 }
 0x1e1   :  { %v339_v55 = vadd.f32 %v770_v49, %v664_v51 }
 0x1e2   :  { %v330_v50 = vpop.f32.mrf.mxu1 }
 0x1e3   :  { %v331_v53 = vadd.f32 %v664_v51, %v330_v50  ;;  %v347_v61 = vmax.f32 %v339_v55, 0.0 }
 0x1e4   :  { %v771_v52 = vpop.f32.mrf.mxu1 }
 0x1e5   :  { %v342_v54 = vadd.f32 %v771_v52, %v664_v51  ;;  %v345_v59 = vmax.f32 %v331_v53, 0.0 }
 0x1e6   :  { %v333_v56 = vpop.f32.mrf.mxu1 }
 0x1e7   :  { %v334_v57 = vadd.f32 %v664_v51, %v333_v56  ;;  %v348_v58 = vmax.f32 %v342_v54, 0.0 }
 0x1e9   :  { %v346_v60 = vmax.f32 %v334_v57, 0.0  ;;  %v350_v63 = vpack.c.bf16 %v348_v58, %v347_v61 }
 0x1eb   :  { %v349_v62 = vpack.c.bf16 %v346_v60, %v345_v59 }
 0x1ed   :  { %788 = vmatprep.mubr.bf16.mxu0 %v349_v62  ;;  %808 = vmatprep.mubr.bf16.mxu1 %v349_v62 }
 0x1ee   :  { %789 = vmatmul.mubr.bf16.vlgmr.msra.gmra.mxu0 %v350_v63  ;;  %809 = vmatmul.mubr.bf16.vlgmr.msra.gmra.mxu1 %v350_v63 }
 0x2ae   :  { %v790_v2 = vpop.f32.mrf.mxu0  ;;  %v810_v3 = vpop.f32.mrf.mxu1 }
 0x2af   :  { %v465_v4 = vadd.f32 %v790_v2, %v673_v0  ;;  %v591_v5 = vadd.f32 %v810_v3, %v683_v1 }
 0x2b0   :  { %v456_v6 = vpop.f32.mrf.mxu0  ;;  %v582_v7 = vpop.f32.mrf.mxu1 }
 0x2b1   :  { %v473_v8 = vmax.f32 %v465_v4, 0.0  ;;  %v599_v9 = vmax.f32 %v591_v5, 0.0  ;;  %v457_v10 = vadd.f32 %v673_v0, %v456_v6  ;;  %v583_v11 = vadd.f32 %v683_v1, %v582_v7 }
 0x2b2   :  { %v791_v12 = vpop.f32.mrf.mxu0  ;;  %v811_v13 = vpop.f32.mrf.mxu1 }
 0x2b3   :  { %v471_v14 = vmax.f32 %v457_v10, 0.0  ;;  %v597_v15 = vmax.f32 %v583_v11, 0.0  ;;  %v468_v16 = vadd.f32 %v791_v12, %v673_v0  ;;  %v594_v17 = vadd.f32 %v811_v13, %v683_v1 }
 0x2b4   :  { %v459_v18 = vpop.f32.mrf.mxu0  ;;  %v585_v19 = vpop.f32.mrf.mxu1  ;;  %v603_v20 = vmax.f32 %v473_v8, %v599_v9 }
 0x2b5   :  { %v474_v21 = vmax.f32 %v468_v16, 0.0  ;;  %v600_v22 = vmax.f32 %v594_v17, 0.0  ;;  %v460_v23 = vadd.f32 %v673_v0, %v459_v18  ;;  %v586_v24 = vadd.f32 %v683_v1, %v585_v19 }
 0x2b6   :  { %609 = vrot.lane.b32.xlu1 %v603_v20, %s966_s29  ;;  %v601_v25 = vmax.f32 %v471_v14, %v597_v15 }
 0x2b7   :  { %v472_v26 = vmax.f32 %v460_v23, 0.0  ;;  %v598_v27 = vmax.f32 %v586_v24, 0.0  ;;  %v604_v28 = vmax.f32 %v474_v21, %v600_v22 }
 0x2b8   :  { %605 = vrot.lane.b32.xlu0 %v601_v25, %s966_s29 }
 0x2b9   :  { %v602_v29 = vmax.f32 %v472_v26, %v598_v27 }
 0x2ba   :  { %611 = vrot.lane.b32.xlu1 %v604_v28, %s966_s29 }
 0x2bc   :  { %607 = vrot.lane.b32.xlu0 %v602_v29, %s966_s29 }
 0x328   :  { %v610_v30 = vpop.permute.xlu1 %609 }
 0x329   :  { %v615_v34 = vmax.f32 %v603_v20, %v610_v30 }
 0x32a   :  { %v606_v31 = vpop.permute.xlu0 %605 }
 0x32b   :  { %v613_v32 = vmax.f32 %v601_v25, %v606_v31 }
 0x32c   :  { %v612_v36 = vpop.permute.xlu1 %611 }
 0x32d   :  { %617 = vrot.lane.b32.xlu0 %v613_v32, %s970_s6  ;;  %v616_v37 = vmax.f32 %v604_v28, %v612_v36 }
 0x32e   :  { %v608_v33 = vpop.permute.xlu0 %607 }
 0x32f   :  { %v614_v35 = vmax.f32 %v602_v29, %v608_v33 }
 0x331   :  { %621 = vrot.lane.b32.xlu0 %v615_v34, %s970_s6  ;;  %619 = vrot.lane.b32.xlu1 %v614_v35, %s970_s6 }
 0x335   :  { %623 = vrot.lane.b32.xlu1 %v616_v37, %s970_s6 }
 0x39f   :  { %v618_v38 = vpop.permute.xlu0 %617 }
 0x3a0   :  { %v625_v39 = vmax.f32 %v613_v32, %v618_v38 }
 0x3a2   :  { %630 = vst.msk [vmem:[#allocation10] sm:$0xff] %vm629_vm0, %v625_v39 }
 0x3a3   :  { %v620_v40 = vpop.permute.xlu1 %619  ;;  %v622_v41 = vpop.permute.xlu0 %621 }
 0x3a4   :  { %v626_v42 = vmax.f32 %v614_v35, %v620_v40  ;;  %v627_v43 = vmax.f32 %v615_v34, %v622_v41 }
 0x3a6   :  { %631 = vst.msk [vmem:[#allocation10 + $0x8] sm:$0xff] %vm629_vm0, %v626_v42  ;;  %632 = vst.msk [vmem:[#allocation10 + $0x10] sm:$0xff] %vm629_vm0, %v627_v43 }
 0x3a7   :  { %v624_v44 = vpop.permute.xlu1 %623 }
 0x3a8   :  { %v628_v45 = vmax.f32 %v616_v37, %v624_v44 }
 0x3aa   :  { %633 = vst.msk [vmem:[#allocation10 + $0x18] sm:$0xff] %vm629_vm0, %v628_v45 }
 0x3ab   :  { %947 = shalt.err (!%p944_p10)
}
 0x3ac   :  { %s972_s28 = smov 128   ;;  %s973_s29 = smov 8  }
 0x3ad   :  { %645 = dma.vmem_to_hbm [thread:$0]  %s640_s26, 512, %s1064_s7, [#allocation4], %s972_s28, %s972_s28, %s973_s29  }
 0x3ae   :  { %962 = dma.done.wait [#allocation4], 512  }
 0x3af   :  { %963 = vsyncadd [#allocation4], 4294966784 }
 0x3b0   :  { %649 = vsyncpa [#allocation3], 1 }
 0x3b1   :  { %650 = vsyncpa [#allocation6], 1 }
 0x3b2   :  { %651 = vsyncpa [#allocation9], 1 }
 0x3b3   :  { %652 = vsyncpa [#allocation4], 1 }

</bundles_post_ra>
